<compile_context>
chip_gen: v6e
topology: v6e:2x2x1
jax: 0.10.0
libtpu: 0.0.40
codegen_flags: <defaults>
</compile_context>

<pallas_src>
import jax
import jax.numpy as jnp
from jax.experimental import pallas as pl
from jax.experimental.pallas import tpu as pltpu


def _nll_loss_kernel(prob_ref, weight_ref, target_ref, out_ref):
    """One (TILE_N, TILE_C) tile of the weighted NLL gather + row-partial sum."""
    j = pl.program_id(1)  # column (reduction) axis — innermost

    # Output block is resident across the reduction axis: zero it on the first
    # column tile, accumulate on every tile.
    @pl.when(j == 0)
    def _init():
        out_ref[...] = jnp.zeros_like(out_ref)

    prob = prob_ref[...].astype(jnp.float32)   # (TN, TC) upcast in-kernel only
    w = weight_ref[...].astype(jnp.float32)    # (1, TC)  broadcast over rows
    t = target_ref[...]                        # (TN, 1)  int32
    tn, tc = prob.shape

    # one_hot[i, c] = (global_column(c) == target[i]); the iota is offset by
    # this column tile's global start so selection is correct across C tiles.
    col = jax.lax.broadcasted_iota(jnp.int32, (tn, tc), 1) + j * tc
    one_hot = col == t

    selected = jnp.where(one_hot, prob * w, 0.0)
    # Lane (XLU) reduce to a per-row partial; accumulate in the f32 output block.
    out_ref[...] += jnp.sum(selected, axis=-1, keepdims=True)


def _round_up(x, m):
    return (x + m - 1) // m * m


def nll_loss(prob, weight, target, *, tile_n=512, tile_c=512):
    """loss = -sum_i weight[target[i]] * prob[i, target[i]]  (scalar, f32).

    prob: (N, C) float (any float dtype), weight: (C,) float, target: (N,) int.
    """
    N, C = prob.shape
    # Sublane granularity depends on dtype packing: f32 -> 8, bf16 -> 16, i8 -> 32.
    sub = {4: 8, 2: 16, 1: 32}[jnp.dtype(prob.dtype).itemsize]

    # --- column (lane) tiling ------------------------------------------------
    if C <= tile_c:
        tc = C                       # single full-width column block (any C ok)
        c_pad = C
    else:
        tc = tile_c                  # multiple of 128
        c_pad = _round_up(C, tc)

    # --- row (sublane) tiling ------------------------------------------------
    if N <= tile_n:
        tn = _round_up(N, sub)
        n_pad = tn
    else:
        tn = _round_up(tile_n, sub)
        n_pad = _round_up(N, tn)

    # Zero-pad tails: padded prob rows/cols are 0; padded targets point at
    # column 0 of an all-zero row, so they contribute exactly 0 to the sum.
    prob_p = prob
    if (n_pad, c_pad) != (N, C):
        prob_p = jnp.pad(prob, ((0, n_pad - N), (0, c_pad - C)))
    weight_p = jnp.pad(weight.astype(jnp.float32), (0, c_pad - C)).reshape(1, c_pad)
    target_p = jnp.pad(target.astype(jnp.int32), (0, n_pad - N)).reshape(n_pad, 1)

    grid_n = n_pad // tn
    grid_c = c_pad // tc

    partials = pl.pallas_call(
        _nll_loss_kernel,
        out_shape=jax.ShapeDtypeStruct((n_pad, 1), jnp.float32),
        grid_spec=pltpu.PrefetchScalarGridSpec(
            num_scalar_prefetch=0,
            grid=(grid_n, grid_c),
            in_specs=[
                pl.BlockSpec((tn, tc), lambda i, j: (i, j)),   # prob tile
                pl.BlockSpec((1, tc), lambda i, j: (0, j)),    # weight row tile
                pl.BlockSpec((tn, 1), lambda i, j: (i, 0)),    # target block
            ],
            # Per-row partials; index_map ignores j -> accumulator resident
            # across the reduction axis.
            out_specs=pl.BlockSpec((tn, 1), lambda i, j: (i, 0)),
        ),
        compiler_params=pltpu.CompilerParams(
            dimension_semantics=("parallel", "arbitrary"),
        ),
    )(prob_p, weight_p, target_p)

    # Tiny final reduction + negation in the wrapper (keeps the N grid axis
    # shardable across TensorCores on v7x).
    return -jnp.sum(partials)


def _reference(prob, weight, target):
    N = prob.shape[0]
    return -jnp.sum(weight[target] * prob[jnp.arange(N), target])


if __name__ == "__main__":
    key = jax.random.PRNGKey(0)
    k_prob, k_w, k_t = jax.random.split(key, 3)

    # Small shapes consistent with the module's (N, C) / (C,) / (N,) signature.
    N, C = 8, 32
    prob = jax.random.uniform(k_prob, (N, C), dtype=jnp.float32)
    weight = jax.random.uniform(k_w, (C,), dtype=jnp.float32) + 0.5
    target = jax.random.randint(k_t, (N,), 0, C, dtype=jnp.int32)

    loss = nll_loss(prob, weight, target)
    jax.block_until_ready(loss)
    ref = _reference(prob, weight, target)
    assert jnp.allclose(loss, ref, rtol=1e-5, atol=1e-5), (loss, ref)

    # Additional check exercising the tiled / padded path (grid > 1 in both
    # axes, non-multiple-of-(8,128) shapes).
    k2_prob, k2_w, k2_t = jax.random.split(jax.random.PRNGKey(1), 3)
    N2, C2 = 1100, 700
    prob2 = jax.random.uniform(k2_prob, (N2, C2), dtype=jnp.float32)
    weight2 = jax.random.uniform(k2_w, (C2,), dtype=jnp.float32) + 0.5
    target2 = jax.random.randint(k2_t, (N2,), 0, C2, dtype=jnp.int32)

    loss2 = nll_loss(prob2, weight2, target2)
    jax.block_until_ready(loss2)
    ref2 = _reference(prob2, weight2, target2)
    assert jnp.allclose(loss2, ref2, rtol=1e-4, atol=1e-3), (loss2, ref2)

    print("KERNEL_OK")
</pallas_src>

<mosaic_0001>
module attributes {stable_mosaic.version = 11 : i64} {
  func.func @_nll_loss_kernel(%arg0: i32, %arg1: i32, %arg2: memref<8x32xf32, #tpu.memory_space<vmem>>, %arg3: memref<1x32xf32, #tpu.memory_space<vmem>>, %arg4: memref<8x1xi32, #tpu.memory_space<vmem>>, %arg5: memref<8x1xf32, #tpu.memory_space<vmem>>) attributes {dimension_semantics = [#tpu.dimension_semantics<parallel>, #tpu.dimension_semantics<arbitrary>], iteration_bounds = array<i64: 1, 1>, scalar_prefetch = 0 : i64, scratch_operands = 0 : i64, tpu.core_type = #tpu.core_type<tc>, window_params = [{transform_indices = @transform_0, window_bounds = array<i64: 8, 32>}, {transform_indices = @transform_1, window_bounds = array<i64: 1, 32>}, {transform_indices = @transform_2, window_bounds = array<i64: 8, 1>}, {transform_indices = @transform_3, window_bounds = array<i64: 8, 1>}]} {
    %c0_i32 = arith.constant 0 : i32
    %0 = arith.cmpi eq, %arg1, %c0_i32 : i32
    %1 = arith.extui %0 : i1 to i32
    %c0_i32_0 = arith.constant 0 : i32
    %2 = arith.cmpi ne, %1, %c0_i32_0 : i32
    scf.if %2 {
      %cst_11 = arith.constant 0.000000e+00 : f32
      %21 = vector.broadcast %cst_11 : f32 to vector<8x1xf32>
      %c0_12 = arith.constant 0 : index
      %c0_13 = arith.constant 0 : index
      %22 = vector.load %arg5[%c0_12, %c0_13] : memref<8x1xf32, #tpu.memory_space<vmem>>, vector<8x1xf32>
      tpu.vector_store %arg5[%c0_12, %c0_13], %21 {strides = array<i32>} : memref<8x1xf32, #tpu.memory_space<vmem>>, vector<8x1xf32>,
    } else {
    }
    %c0 = arith.constant 0 : index
    %c0_1 = arith.constant 0 : index
    %3 = vector.load %arg2[%c0, %c0_1] : memref<8x32xf32, #tpu.memory_space<vmem>>, vector<8x32xf32>
    %c0_2 = arith.constant 0 : index
    %c0_3 = arith.constant 0 : index
    %4 = vector.load %arg3[%c0_2, %c0_3] : memref<1x32xf32, #tpu.memory_space<vmem>>, vector<1x32xf32>
    %c0_4 = arith.constant 0 : index
    %c0_5 = arith.constant 0 : index
    %5 = vector.load %arg4[%c0_4, %c0_5] : memref<8x1xi32, #tpu.memory_space<vmem>>, vector<8x1xi32>
    %6 = tpu.iota {dimensions = array<i32: 1>} : vector<8x32xi32>
    %c32_i32 = arith.constant 32 : i32
    %7 = arith.muli %arg1, %c32_i32 : i32
    %8 = vector.broadcast %7 : i32 to vector<8x32xi32>
    %9 = arith.addi %6, %8 : vector<8x32xi32>
    %10 = vector.broadcast %5 : vector<8x1xi32> to vector<8x32xi32>
    %11 = arith.cmpi eq, %9, %10 : vector<8x32xi32>
    %12 = vector.broadcast %4 : vector<1x32xf32> to vector<8x32xf32>
    %13 = arith.mulf %3, %12 : vector<8x32xf32>
    %cst = arith.constant 0.000000e+00 : f32
    %14 = vector.broadcast %cst : f32 to vector<8x32xf32>
    %15 = arith.select %11, %13, %14 : vector<8x32xi1>, vector<8x32xf32>
    %c0_6 = arith.constant 0 : index
    %c0_7 = arith.constant 0 : index
    %16 = vector.load %arg5[%c0_6, %c0_7] : memref<8x1xf32, #tpu.memory_space<vmem>>, vector<8x1xf32>
    %cst_8 = arith.constant dense<0.000000e+00> : vector<8xf32>
    %17 = vector.multi_reduction <add>, %15, %cst_8 [1] : vector<8x32xf32> to vector<8xf32>
    %18 = vector.shape_cast %17 : vector<8xf32> to vector<8x1xf32>
    %19 = arith.addf %16, %18 : vector<8x1xf32>
    %c0_9 = arith.constant 0 : index
    %c0_10 = arith.constant 0 : index
    %20 = vector.load %arg5[%c0_9, %c0_10] : memref<8x1xf32, #tpu.memory_space<vmem>>, vector<8x1xf32>
    tpu.vector_store %arg5[%c0_9, %c0_10], %19 {strides = array<i32>} : memref<8x1xf32, #tpu.memory_space<vmem>>, vector<8x1xf32>,
    return
  }
  func.func @transform_0(%arg0: i32, %arg1: i32) -> (i32, i32) {
    %c0_i32 = arith.constant 0 : i32
    return %arg0, %arg1 : i32, i32
  }
  func.func @transform_1(%arg0: i32, %arg1: i32) -> (i32, i32) {
    %c0_i32 = arith.constant 0 : i32
    %c0_i32_0 = arith.constant 0 : i32
    return %c0_i32, %arg1 : i32, i32
  }
  func.func @transform_2(%arg0: i32, %arg1: i32) -> (i32, i32) {
    %c0_i32 = arith.constant 0 : i32
    %c0_i32_0 = arith.constant 0 : i32
    return %arg0, %c0_i32 : i32, i32
  }
  func.func @transform_3(%arg0: i32, %arg1: i32) -> (i32, i32) {
    %c0_i32 = arith.constant 0 : i32
    %c0_i32_0 = arith.constant 0 : i32
    return %arg0, %c0_i32 : i32, i32
  }
}

</mosaic_0001>

<bundles_post_ra>
// kernel: tpu_custom_call.1
= control target key start
LH: loop header
LB: loop body
LE: loop exit
PB: predicated region body
PF: predicated region fallthrough
CT: control target
= control target key end

     0   :  { %v56_v0 = vmov 0   ;;  %vm18_vm0 = vcmask 7168   ;;  %v57_v2 = vmov 0.0   ;;  %v23_v3 = vlaneseq  ;;  %s98_s2 = inlined_call_operand.vmem [shape: s32[8,1], index: 2, kind: input, shape index: {}]   ;;  %s99_s3 = inlined_call_operand.vmem [shape: f32[8,1], index: 3, kind: output, shape index: {}]   ;;  %s100_s0 = inlined_call_operand.vmem [shape: f32[8,32], index: 0, kind: input, shape index: {}]   ;;  %s101_s1 = inlined_call_operand.vmem [shape: f32[1,32], index: 1, kind: input, shape index: {}]  }
   0x1   :  { %55 = vset.pattern.permute.xlu0 %v56_v0  ;;  %v22_v1 = vld [vmem:[%s98_s2] sm:$0xff]  ;;  %19 = vst.msk [vmem:[%s99_s3] sm:$0xff] %vm18_vm0, %v57_v2  ;;  %vm41_vm1 = vcmask 261120  }
   0x2   :  { %29 = vperm.xlu0 %55, %v22_v1   ;;  %v20_v4 = vld [vmem:[%s100_s0] sm:$0xff]  ;;  %v24_v6 = vand.u32 127, %v23_v3 }
   0x3   :  { %v52_v5 = vld [vmem:[%s101_s1] ss:$0 sm:$0xff] }
   0x4   :  { %v38_v7 = vmul.f32 %v52_v5, %v20_v4 }
   0x8   :  { %v40_v11 = vld [vmem:[%s99_s3] sm:$0xff] }
  0x7d   :  { %v30_v8 = vpop.permute.xlu0 %29 }
  0x7e   :  { %vm31_vm2 = vcmp.eq.s32.totalorder %v24_v6, %v30_v8 }
  0x7f   :  { %v39_v9 = vsel %vm31_vm2, %v38_v7, 0.0 }
  0x80   :  { %v42_v10 = vsel %vm41_vm1, %v39_v9, 0.0 }
  0x81   :  { %43 = vadd.xlane.f32.xlu0 %v42_v10 }
 0x10a   :  { %v44_v12 = vpop.xlane.xlu0 %43 }
 0x10b   :  { %v45_v13 = vadd.f32 %v44_v12, %v40_v11 }
 0x10d   :  { %47 = vst.msk [vmem:[%s99_s3] sm:$0xff] %vm18_vm0, %v45_v13 }

</bundles_post_ra>
